<compile_context>
chip_gen: v7x
topology: tpu7x:2x2x1
jax: 0.10.0
libtpu: 0.0.40
codegen_flags: <defaults>
</compile_context>

<pallas_src>
import functools

import jax
import jax.numpy as jnp
import numpy as np
from jax.experimental import pallas as pl
from jax.experimental.pallas import tpu as pltpu


def _round_up(n, m):
    return ((n + m - 1) // m) * m


# --------------------------------------------------------------------------
# Kernel: one grid step = one (batch block, time step)
# --------------------------------------------------------------------------
def grud_ode_seq_kernel(xs_ref, h0_ref, w1_ref, b1_ref, w2_ref, out_ref,
                        h_scr, act_scr, *, input_size, hidden_size):
    I, H = input_size, hidden_size
    t = pl.program_id(1)

    @pl.when(t == 0)
    def _():
        # New batch block: load its initial hidden state and clear the
        # activation scratch once (its zero-padded lanes are never rewritten).
        h_scr[...] = h0_ref[...]
        act_scr[...] = jnp.zeros_like(act_scr)

    x = xs_ref[0]        # (B_blk, in_lanes); lanes >= I are zero
    m = xs_ref[1]
    prex = xs_ref[2]
    h = h_scr[...]       # (B_blk, H) carried hidden state

    # Masked imputation (pad lanes stay zero: m == 0 and prex == 0 there).
    x_imp = m * x + (1.0 - m) * prex

    # Assemble the fused-GEMM activation [x_imp | m | h | 0] with
    # static-offset slice stores (no lane-dimension concatenates).
    act_scr[:, 0:I] = x_imp[:, 0:I]
    act_scr[:, I:2 * I] = m[:, 0:I]
    act_scr[:, 2 * I:2 * I + H] = h

    # One fused MXU push: [r_pre | z_pre | u_partial] = act @ W1 + b1.
    w1 = w1_ref[...]
    pre = jnp.dot(act_scr[...].astype(w1.dtype), w1,
                  preferred_element_type=jnp.float32) + b1_ref[...]
    r = jax.nn.sigmoid(pre[:, 0:H])
    z = jax.nn.sigmoid(pre[:, H:2 * H])

    # Small r-dependent GEMM (K = H) for the candidate's recurrent term.
    w2 = w2_ref[...]
    u = jnp.tanh(pre[:, 2 * H:3 * H]
                 + jnp.dot((r * h).astype(w2.dtype), w2,
                           preferred_element_type=jnp.float32))

    h_new = (1.0 - z) * h + z * u
    dh = z * (u - h)
    h_scr[...] = h_new                     # carry to the next time step

    # Lane-packed output row: [h_post | dh | x_imp | zeros].
    out_ref[:, 0:H] = h_new
    out_ref[:, H:2 * H] = dh
    out_ref[:, 2 * H:2 * H + I] = x_imp[:, 0:I]
    pad = out_ref.shape[1] - (2 * H + I)
    if pad > 0:
        out_ref[:, 2 * H + I:] = jnp.zeros((out_ref.shape[0], pad),
                                           out_ref.dtype)


# --------------------------------------------------------------------------
# Parameter init (shapes match the torch module) + one-time weight fusion
# --------------------------------------------------------------------------
def init_params(key, input_size, hidden_size, dtype=jnp.float32):
    ks = jax.random.split(key, 16)
    s = 0.1
    return {
        # Decay-gate parameters: kept for module-shape fidelity, but they feed
        # only gamma_x / gamma_h which the torch forward never applies.
        "w_dg_x": jax.random.normal(ks[0], (input_size,), dtype) * s,
        "b_dg_x": jax.random.normal(ks[1], (input_size,), dtype) * s,
        "w_dg_h": jax.random.normal(ks[2], (hidden_size, input_size), dtype) * s,
        "b_dg_h": jax.random.normal(ks[3], (hidden_size,), dtype) * s,
        # Live parameters.
        "W_xh": jax.random.normal(ks[4], (hidden_size, input_size), dtype) * s,
        "b_xh": jax.random.normal(ks[5], (hidden_size,), dtype) * s,
        "W_xz": jax.random.normal(ks[6], (hidden_size, input_size), dtype) * s,
        "b_xz": jax.random.normal(ks[7], (hidden_size,), dtype) * s,
        "W_xr": jax.random.normal(ks[8], (hidden_size, input_size), dtype) * s,
        "b_xr": jax.random.normal(ks[9], (hidden_size,), dtype) * s,
        "W_hu": jax.random.normal(ks[10], (hidden_size, hidden_size), dtype) * s,
        "W_hz": jax.random.normal(ks[11], (hidden_size, hidden_size), dtype) * s,
        "W_hr": jax.random.normal(ks[12], (hidden_size, hidden_size), dtype) * s,
        "W_mu": jax.random.normal(ks[13], (hidden_size, input_size), dtype) * s,
        "W_mz": jax.random.normal(ks[14], (hidden_size, input_size), dtype) * s,
        "W_mr": jax.random.normal(ks[15], (hidden_size, input_size), dtype) * s,
    }


def prepare_params(params, dtype=jnp.float32):
    """Transpose / fuse / pad weights ONCE, outside the hot path.

    W1 rows  = [x (I) | m (I) | h (H) | zero pad to K_pad]
    W1 cols  = [r (H) | z (H) | u_xm (H) | zero pad to N_pad]
       (the h-rows of the u columns are zero; the recurrent candidate term
        r*h @ W_hu^T is applied separately as W2).
    Column/bias ordering here is an explicit contract with the kernel slices
    pre[:, 0:H]=r, pre[:, H:2H]=z, pre[:, 2H:3H]=u_partial.
    """
    H, I = jnp.asarray(params["W_xr"]).shape
    K = 2 * I + H
    k_pad = _round_up(K, 128)
    n_pad = _round_up(3 * H, 128)
    t = lambda w: jnp.asarray(w).T.astype(dtype)       # (in, out)

    w1 = jnp.concatenate(
        [
            jnp.concatenate([t(params["W_xr"]), t(params["W_xz"]),
                             t(params["W_xh"])], axis=1),
            jnp.concatenate([t(params["W_mr"]), t(params["W_mz"]),
                             t(params["W_mu"])], axis=1),
            jnp.concatenate([t(params["W_hr"]), t(params["W_hz"]),
                             jnp.zeros((H, H), dtype)], axis=1),
        ],
        axis=0,
    )                                                   # (2I+H, 3H)
    w1 = jnp.pad(w1, ((0, k_pad - K), (0, n_pad - 3 * H)))
    b1 = jnp.concatenate(
        [params["b_xr"], params["b_xz"], params["b_xh"]]).astype(dtype)
    b1 = jnp.pad(b1, (0, n_pad - 3 * H)).reshape(1, n_pad)
    w2 = t(params["W_hu"])                              # (H, H)
    return {"W1": w1, "b1": b1, "W2": w2}


# --------------------------------------------------------------------------
# Sequence wrapper: ONE pallas_call for all T steps and B cells
# --------------------------------------------------------------------------
def grud_ode_sequence(prepped, h0, xs, ms, prexs, ds=None, means=None):
    """Run T steps of the GRU-D ODE cell for B independent cells.

    h0: (B, H); xs / ms / prexs: (T, B, I).
    ds / means are accepted for signature parity; they feed only the decay
    gates which the reference forward computes but never uses.
    Returns (h_seq, dh_seq, ximp_seq): (T, B, H), (T, B, H), (T, B, I).
    """
    del ds, means
    dt = jnp.float32
    T, B, I = xs.shape
    H = h0.shape[-1]
    k_pad, n_pad = prepped["W1"].shape
    assert 2 * I + H <= k_pad and 3 * H <= n_pad, "prepped params mismatch"

    in_lanes = _round_up(I, 128)
    out_lanes = _round_up(2 * H + I, 128)

    # Batch padded to a sublane multiple; blocks of <=128 rows, batch axis is
    # a "parallel" grid dimension (megacore-shardable on v7x).
    B_pad = _round_up(B, 8)
    if B_pad > 128:
        B_pad = _round_up(B_pad, 128)
        b_blk = 128
    else:
        b_blk = B_pad
    grid_b = B_pad // b_blk

    def pad_seq(a):  # (T, B, I) -> (T, B_pad, in_lanes)
        return jnp.pad(a.astype(dt),
                       ((0, 0), (0, B_pad - B), (0, in_lanes - I)))

    # Pre-pack the whole sequence ONCE: rows = [x, m, prex].
    seq = jnp.stack([pad_seq(xs), pad_seq(ms), pad_seq(prexs)], axis=1)
    h0p = jnp.pad(h0.astype(dt), ((0, B_pad - B), (0, 0)))       # (B_pad, H)

    kernel = functools.partial(grud_ode_seq_kernel,
                               input_size=I, hidden_size=H)

    out = pl.pallas_call(
        kernel,
        out_shape=jax.ShapeDtypeStruct((T, B_pad, out_lanes), dt),
        grid_spec=pltpu.PrefetchScalarGridSpec(
            num_scalar_prefetch=0,
            grid=(grid_b, T),
            in_specs=[
                # Per-step streamed input slab.
                pl.BlockSpec((None, 3, b_blk, in_lanes),
                             lambda b, t: (t, 0, b, 0)),
                # Initial hidden state: fetched once per batch block.
                pl.BlockSpec((b_blk, H), lambda b, t: (b, 0)),
                # Fused weights / bias: constant index map -> DMA'd once,
                # resident in VMEM for the whole grid.
                pl.BlockSpec((k_pad, n_pad), lambda b, t: (0, 0)),
                pl.BlockSpec((1, n_pad), lambda b, t: (0, 0)),
                pl.BlockSpec((H, H), lambda b, t: (0, 0)),
            ],
            out_specs=pl.BlockSpec((None, b_blk, out_lanes),
                                   lambda b, t: (t, b, 0)),
            scratch_shapes=[
                pltpu.VMEM((b_blk, H), dt),       # carried hidden state
                pltpu.VMEM((b_blk, k_pad), dt),   # fused-GEMM activation
            ],
        ),
        compiler_params=pltpu.CompilerParams(
            dimension_semantics=("parallel", "arbitrary")),
    )(seq, h0p, prepped["W1"], prepped["b1"], prepped["W2"])

    h_seq = out[:, :B, 0:H]
    dh_seq = out[:, :B, H:2 * H]
    ximp_seq = out[:, :B, 2 * H:2 * H + I]
    return h_seq, dh_seq, ximp_seq


def grud_ode_cell(prepped, h, x, m, d, prex, mean):
    """Single step matching the torch module signature (1-D inputs)."""
    del d, mean   # decay-gate inputs: dead in the reference forward's outputs
    hs, dhs, xis = grud_ode_sequence(
        prepped, h[None, :], x[None, None, :], m[None, None, :],
        prex[None, None, :])
    return hs[0, 0], dhs[0, 0], xis[0, 0]


# --------------------------------------------------------------------------
# Pure-JAX reference (mirrors the torch forward)
# --------------------------------------------------------------------------
def grud_ode_cell_ref(params, h, x, m, d, prex, mean):
    del d, mean   # gamma_x / gamma_h are computed but never used by forward
    lin = lambda v, W, b=None: (v @ jnp.asarray(W).T
                                + (b if b is not None else 0.0))
    x_imp = m * x + (1.0 - m) * prex
    r = jax.nn.sigmoid(lin(x_imp, params["W_xr"], params["b_xr"])
                       + lin(h, params["W_hr"]) + lin(m, params["W_mr"]))
    z = jax.nn.sigmoid(lin(x_imp, params["W_xz"], params["b_xz"])
                       + lin(h, params["W_hz"]) + lin(m, params["W_mz"]))
    u = jnp.tanh(lin(x_imp, params["W_xh"], params["b_xh"])
                 + lin(r * h, params["W_hu"]) + lin(m, params["W_mu"]))
    h_post = (1.0 - z) * h + z * u
    dh = z * (u - h)
    return h_post, dh, x_imp


def grud_ode_sequence_ref(params, h0, xs, ms, prexs):
    h = h0
    hs, dhs, xis = [], [], []
    for t in range(xs.shape[0]):
        h, dh, xi = grud_ode_cell_ref(params, h, xs[t], ms[t], None,
                                      prexs[t], None)
        hs.append(h), dhs.append(dh), xis.append(xi)
    return jnp.stack(hs), jnp.stack(dhs), jnp.stack(xis)


if __name__ == "__main__":
    input_size, hidden_size = 16, 32
    T, B = 8, 8

    key = jax.random.PRNGKey(0)
    pkey, dkey = jax.random.split(key)
    params = init_params(pkey, input_size, hidden_size)
    prepped = prepare_params(params)          # one-time weight fusion

    ks = jax.random.split(dkey, 6)
    h0 = jax.random.normal(ks[0], (B, hidden_size), jnp.float32)
    xs = jax.random.normal(ks[1], (T, B, input_size), jnp.float32)
    ms = (jax.random.uniform(ks[2], (T, B, input_size)) > 0.5).astype(jnp.float32)
    prexs = jax.random.normal(ks[3], (T, B, input_size), jnp.float32)
    d = jax.random.uniform(ks[4], (input_size,), jnp.float32)     # dead input
    mean = jax.random.normal(ks[5], (input_size,), jnp.float32)   # dead input

    # --- fused sequence kernel vs stepped pure-JAX reference ---------------
    fwd = jax.jit(grud_ode_sequence)
    outs = jax.block_until_ready(fwd(prepped, h0, xs, ms, prexs))
    refs = grud_ode_sequence_ref(params, h0, xs, ms, prexs)
    for o, r in zip(outs, refs):
        # Tolerance covers default-precision MXU rounding accumulated over T
        # recurrent steps (f32 weights/activations throughout).
        np.testing.assert_allclose(np.asarray(o), np.asarray(r),
                                   rtol=1e-4, atol=1e-4)

    # --- single step matching the torch module's forward signature ---------
    step = jax.jit(grud_ode_cell)
    one = jax.block_until_ready(
        step(prepped, h0[0], xs[0, 0], ms[0, 0], d, prexs[0, 0], mean))
    one_ref = grud_ode_cell_ref(params, h0[0], xs[0, 0], ms[0, 0], d,
                                prexs[0, 0], mean)
    for o, r in zip(one, one_ref):
        np.testing.assert_allclose(np.asarray(o), np.asarray(r),
                                   rtol=1e-5, atol=1e-5)

    print("KERNEL_OK")
</pallas_src>

<mosaic_0001>
module attributes {stable_mosaic.version = 11 : i64} {
  func.func @grud_ode_seq_kernel(%arg0: i32, %arg1: i32, %arg2: memref<1x3x8x128xf32, #tpu.memory_space<vmem>>, %arg3: memref<8x32xf32, #tpu.memory_space<vmem>>, %arg4: memref<128x128xf32, #tpu.memory_space<vmem>>, %arg5: memref<1x128xf32, #tpu.memory_space<vmem>>, %arg6: memref<32x32xf32, #tpu.memory_space<vmem>>, %arg7: memref<1x8x128xf32, #tpu.memory_space<vmem>>, %arg8: memref<8x32xf32, #tpu.memory_space<vmem>>, %arg9: memref<8x128xf32, #tpu.memory_space<vmem>>) attributes {dimension_semantics = [#tpu.dimension_semantics<parallel>, #tpu.dimension_semantics<arbitrary>], iteration_bounds = array<i64: 1, 8>, scalar_prefetch = 0 : i64, scratch_operands = 2 : i64, tpu.core_type = #tpu.core_type<tc>, window_params = [{transform_indices = @transform_0, window_bounds = array<i64: 1, 3, 8, 128>}, {transform_indices = @transform_1, window_bounds = array<i64: 8, 32>}, {pipeline_mode = #tpu.pipeline_mode<synchronous>, transform_indices = @transform_2, window_bounds = array<i64: 128, 128>}, {pipeline_mode = #tpu.pipeline_mode<synchronous>, transform_indices = @transform_3, window_bounds = array<i64: 1, 128>}, {pipeline_mode = #tpu.pipeline_mode<synchronous>, transform_indices = @transform_4, window_bounds = array<i64: 32, 32>}, {transform_indices = @transform_5, window_bounds = array<i64: 1, 8, 128>}]} {
    %c0_i32 = arith.constant 0 : i32
    %0 = arith.cmpi eq, %arg1, %c0_i32 : i32
    %1 = arith.extui %0 : i1 to i32
    %c0_i32_0 = arith.constant 0 : i32
    %2 = arith.cmpi ne, %1, %c0_i32_0 : i32
    scf.if %2 {
      %c0_42 = arith.constant 0 : index
      %c0_43 = arith.constant 0 : index
      %66 = vector.load %arg3[%c0_42, %c0_43] : memref<8x32xf32, #tpu.memory_space<vmem>>, vector<8x32xf32>
      %c0_44 = arith.constant 0 : index
      %c0_45 = arith.constant 0 : index
      %67 = vector.load %arg8[%c0_44, %c0_45] : memref<8x32xf32, #tpu.memory_space<vmem>>, vector<8x32xf32>
      tpu.vector_store %arg8[%c0_44, %c0_45], %66 {strides = array<i32>} : memref<8x32xf32, #tpu.memory_space<vmem>>, vector<8x32xf32>,
      %cst_46 = arith.constant 0.000000e+00 : f32
      %68 = vector.broadcast %cst_46 : f32 to vector<8x128xf32>
      %c0_47 = arith.constant 0 : index
      %c0_48 = arith.constant 0 : index
      %69 = vector.load %arg9[%c0_47, %c0_48] : memref<8x128xf32, #tpu.memory_space<vmem>>, vector<8x128xf32>
      tpu.vector_store %arg9[%c0_47, %c0_48], %68 {strides = array<i32>} : memref<8x128xf32, #tpu.memory_space<vmem>>, vector<8x128xf32>,
    } else {
    }
    %c0 = arith.constant 0 : index
    %c0_1 = arith.constant 0 : index
    %c0_2 = arith.constant 0 : index
    %c0_3 = arith.constant 0 : index
    %3 = vector.load %arg2[%c0, %c0_1, %c0_2, %c0_3] : memref<1x3x8x128xf32, #tpu.memory_space<vmem>>, vector<1x1x8x128xf32>
    %4 = vector.shape_cast %3 : vector<1x1x8x128xf32> to vector<8x128xf32>
    %c0_4 = arith.constant 0 : index
    %c1 = arith.constant 1 : index
    %c0_5 = arith.constant 0 : index
    %c0_6 = arith.constant 0 : index
    %5 = vector.load %arg2[%c0_4, %c1, %c0_5, %c0_6] : memref<1x3x8x128xf32, #tpu.memory_space<vmem>>, vector<1x1x8x128xf32>
    %6 = vector.shape_cast %5 : vector<1x1x8x128xf32> to vector<8x128xf32>
    %c0_7 = arith.constant 0 : index
    %c2 = arith.constant 2 : index
    %c0_8 = arith.constant 0 : index
    %c0_9 = arith.constant 0 : index
    %7 = vector.load %arg2[%c0_7, %c2, %c0_8, %c0_9] : memref<1x3x8x128xf32, #tpu.memory_space<vmem>>, vector<1x1x8x128xf32>
    %8 = vector.shape_cast %7 : vector<1x1x8x128xf32> to vector<8x128xf32>
    %c0_10 = arith.constant 0 : index
    %c0_11 = arith.constant 0 : index
    %9 = vector.load %arg8[%c0_10, %c0_11] : memref<8x32xf32, #tpu.memory_space<vmem>>, vector<8x32xf32>
    %10 = arith.mulf %6, %4 : vector<8x128xf32>
    %cst = arith.constant 1.000000e+00 : f32
    %11 = vector.broadcast %cst : f32 to vector<8x128xf32>
    %12 = arith.subf %11, %6 : vector<8x128xf32>
    %13 = arith.mulf %12, %8 : vector<8x128xf32>
    %14 = arith.addf %10, %13 : vector<8x128xf32>
    %15 = vector.extract_strided_slice %14 {offsets = [0, 0], sizes = [8, 16], strides = [1, 1]} : vector<8x128xf32> to vector<8x16xf32>
    %c0_12 = arith.constant 0 : index
    %c0_13 = arith.constant 0 : index
    %16 = vector.load %arg9[%c0_12, %c0_13] : memref<8x128xf32, #tpu.memory_space<vmem>>, vector<8x16xf32>
    tpu.vector_store %arg9[%c0_12, %c0_13], %15 {strides = array<i32>} : memref<8x128xf32, #tpu.memory_space<vmem>>, vector<8x16xf32>,
    %17 = vector.extract_strided_slice %6 {offsets = [0, 0], sizes = [8, 16], strides = [1, 1]} : vector<8x128xf32> to vector<8x16xf32>
    %c0_14 = arith.constant 0 : index
    %c16 = arith.constant 16 : index
    %18 = vector.load %arg9[%c0_14, %c16] : memref<8x128xf32, #tpu.memory_space<vmem>>, vector<8x16xf32>
    tpu.vector_store %arg9[%c0_14, %c16], %17 {strides = array<i32>} : memref<8x128xf32, #tpu.memory_space<vmem>>, vector<8x16xf32>,
    %c0_15 = arith.constant 0 : index
    %c32 = arith.constant 32 : index
    %19 = vector.load %arg9[%c0_15, %c32] : memref<8x128xf32, #tpu.memory_space<vmem>>, vector<8x32xf32>
    tpu.vector_store %arg9[%c0_15, %c32], %9 {strides = array<i32>} : memref<8x128xf32, #tpu.memory_space<vmem>>, vector<8x32xf32>,
    %c0_16 = arith.constant 0 : index
    %c0_17 = arith.constant 0 : index
    %20 = vector.load %arg4[%c0_16, %c0_17] : memref<128x128xf32, #tpu.memory_space<vmem>>, vector<128x128xf32>
    %c0_18 = arith.constant 0 : index
    %c0_19 = arith.constant 0 : index
    %21 = vector.load %arg9[%c0_18, %c0_19] : memref<8x128xf32, #tpu.memory_space<vmem>>, vector<8x128xf32>
    %cst_20 = arith.constant dense<0.000000e+00> : vector<8x128xf32>
    %22 = tpu.matmul %21, %20, %cst_20 {dimension_numbers = #tpu.dot_dimension_numbers<[1], [0], [0], [1], [0, 0, 1, 1], [], []>} : vector<8x128xf32>, vector<128x128xf32>, vector<8x128xf32> -> vector<8x128xf32>
    %c0_21 = arith.constant 0 : index
    %c0_22 = arith.constant 0 : index
    %23 = vector.load %arg5[%c0_21, %c0_22] : memref<1x128xf32, #tpu.memory_space<vmem>>, vector<1x128xf32>
    %24 = vector.broadcast %23 : vector<1x128xf32> to vector<8x128xf32>
    %25 = arith.addf %22, %24 : vector<8x128xf32>
    %26 = vector.extract_strided_slice %25 {offsets = [0, 0], sizes = [8, 32], strides = [1, 1]} : vector<8x128xf32> to vector<8x32xf32>
    %27 = arith.negf %26 : vector<8x32xf32>
    %28 = math.exp %27 : vector<8x32xf32>
    %cst_23 = arith.constant 1.000000e+00 : f32
    %29 = vector.broadcast %cst_23 : f32 to vector<8x32xf32>
    %30 = arith.addf %29, %28 : vector<8x32xf32>
    %31 = arith.divf %29, %30 : vector<8x32xf32>
    %32 = vector.extract_strided_slice %25 {offsets = [0, 32], sizes = [8, 32], strides = [1, 1]} : vector<8x128xf32> to vector<8x32xf32>
    %33 = arith.negf %32 : vector<8x32xf32>
    %34 = math.exp %33 : vector<8x32xf32>
    %cst_24 = arith.constant 1.000000e+00 : f32
    %35 = vector.broadcast %cst_24 : f32 to vector<8x32xf32>
    %36 = arith.addf %35, %34 : vector<8x32xf32>
    %37 = arith.divf %35, %36 : vector<8x32xf32>
    %c0_25 = arith.constant 0 : index
    %c0_26 = arith.constant 0 : index
    %38 = vector.load %arg6[%c0_25, %c0_26] : memref<32x32xf32, #tpu.memory_space<vmem>>, vector<32x32xf32>
    %39 = vector.extract_strided_slice %25 {offsets = [0, 64], sizes = [8, 32], strides = [1, 1]} : vector<8x128xf32> to vector<8x32xf32>
    %40 = arith.mulf %31, %9 : vector<8x32xf32>
    %cst_27 = arith.constant dense<0.000000e+00> : vector<8x32xf32>
    %41 = tpu.matmul %40, %38, %cst_27 {dimension_numbers = #tpu.dot_dimension_numbers<[1], [0], [0], [1], [0, 0, 1, 1], [], []>} : vector<8x32xf32>, vector<32x32xf32>, vector<8x32xf32> -> vector<8x32xf32>
    %42 = arith.addf %39, %41 : vector<8x32xf32>
    %43 = math.tanh %42 : vector<8x32xf32>
    %cst_28 = arith.constant 1.000000e+00 : f32
    %44 = vector.broadcast %cst_28 : f32 to vector<8x32xf32>
    %45 = arith.subf %44, %37 : vector<8x32xf32>
    %46 = arith.mulf %45, %9 : vector<8x32xf32>
    %47 = arith.mulf %37, %43 : vector<8x32xf32>
    %48 = arith.addf %46, %47 : vector<8x32xf32>
    %49 = arith.subf %43, %9 : vector<8x32xf32>
    %50 = arith.mulf %37, %49 : vector<8x32xf32>
    %c0_29 = arith.constant 0 : index
    %c0_30 = arith.constant 0 : index
    %51 = vector.load %arg8[%c0_29, %c0_30] : memref<8x32xf32, #tpu.memory_space<vmem>>, vector<8x32xf32>
    tpu.vector_store %arg8[%c0_29, %c0_30], %48 {strides = array<i32>} : memref<8x32xf32, #tpu.memory_space<vmem>>, vector<8x32xf32>,
    %c0_31 = arith.constant 0 : index
    %c0_32 = arith.constant 0 : index
    %c0_33 = arith.constant 0 : index
    %52 = vector.load %arg7[%c0_31, %c0_32, %c0_33] : memref<1x8x128xf32, #tpu.memory_space<vmem>>, vector<1x8x32xf32>
    %53 = vector.shape_cast %52 : vector<1x8x32xf32> to vector<8x32xf32>
    %54 = vector.shape_cast %48 : vector<8x32xf32> to vector<1x8x32xf32>
    tpu.vector_store %arg7[%c0_31, %c0_32, %c0_33], %54 {strides = array<i32>} : memref<1x8x128xf32, #tpu.memory_space<vmem>>, vector<1x8x32xf32>,
    %c0_34 = arith.constant 0 : index
    %c0_35 = arith.constant 0 : index
    %c32_36 = arith.constant 32 : index
    %55 = vector.load %arg7[%c0_34, %c0_35, %c32_36] : memref<1x8x128xf32, #tpu.memory_space<vmem>>, vector<1x8x32xf32>
    %56 = vector.shape_cast %55 : vector<1x8x32xf32> to vector<8x32xf32>
    %57 = vector.shape_cast %50 : vector<8x32xf32> to vector<1x8x32xf32>
    tpu.vector_store %arg7[%c0_34, %c0_35, %c32_36], %57 {strides = array<i32>} : memref<1x8x128xf32, #tpu.memory_space<vmem>>, vector<1x8x32xf32>,
    %58 = vector.extract_strided_slice %14 {offsets = [0, 0], sizes = [8, 16], strides = [1, 1]} : vector<8x128xf32> to vector<8x16xf32>
    %c0_37 = arith.constant 0 : index
    %c0_38 = arith.constant 0 : index
    %c64 = arith.constant 64 : index
    %59 = vector.load %arg7[%c0_37, %c0_38, %c64] : memref<1x8x128xf32, #tpu.memory_space<vmem>>, vector<1x8x16xf32>
    %60 = vector.shape_cast %59 : vector<1x8x16xf32> to vector<8x16xf32>
    %61 = vector.shape_cast %58 : vector<8x16xf32> to vector<1x8x16xf32>
    tpu.vector_store %arg7[%c0_37, %c0_38, %c64], %61 {strides = array<i32>} : memref<1x8x128xf32, #tpu.memory_space<vmem>>, vector<1x8x16xf32>,
    %cst_39 = arith.constant 0.000000e+00 : f32
    %62 = vector.broadcast %cst_39 : f32 to vector<8x48xf32>
    %c0_40 = arith.constant 0 : index
    %c0_41 = arith.constant 0 : index
    %c80 = arith.constant 80 : index
    %63 = vector.load %arg7[%c0_40, %c0_41, %c80] : memref<1x8x128xf32, #tpu.memory_space<vmem>>, vector<1x8x48xf32>
    %64 = vector.shape_cast %63 : vector<1x8x48xf32> to vector<8x48xf32>
    %65 = vector.shape_cast %62 : vector<8x48xf32> to vector<1x8x48xf32>
    tpu.vector_store %arg7[%c0_40, %c0_41, %c80], %65 {strides = array<i32>} : memref<1x8x128xf32, #tpu.memory_space<vmem>>, vector<1x8x48xf32>,
    return
  }
  func.func @transform_0(%arg0: i32, %arg1: i32) -> (i32, i32, i32, i32) {
    %c0_i32 = arith.constant 0 : i32
    %c0_i32_0 = arith.constant 0 : i32
    %c0_i32_1 = arith.constant 0 : i32
    return %arg1, %c0_i32, %arg0, %c0_i32_0 : i32, i32, i32, i32
  }
  func.func @transform_1(%arg0: i32, %arg1: i32) -> (i32, i32) {
    %c0_i32 = arith.constant 0 : i32
    %c0_i32_0 = arith.constant 0 : i32
    return %arg0, %c0_i32 : i32, i32
  }
  func.func @transform_2(%arg0: i32, %arg1: i32) -> (i32, i32) {
    %c0_i32 = arith.constant 0 : i32
    %c0_i32_0 = arith.constant 0 : i32
    %c0_i32_1 = arith.constant 0 : i32
    return %c0_i32, %c0_i32_0 : i32, i32
  }
  func.func @transform_3(%arg0: i32, %arg1: i32) -> (i32, i32) {
    %c0_i32 = arith.constant 0 : i32
    %c0_i32_0 = arith.constant 0 : i32
    %c0_i32_1 = arith.constant 0 : i32
    return %c0_i32, %c0_i32_0 : i32, i32
  }
  func.func @transform_4(%arg0: i32, %arg1: i32) -> (i32, i32) {
    %c0_i32 = arith.constant 0 : i32
    %c0_i32_0 = arith.constant 0 : i32
    %c0_i32_1 = arith.constant 0 : i32
    return %c0_i32, %c0_i32_0 : i32, i32
  }
  func.func @transform_5(%arg0: i32, %arg1: i32) -> (i32, i32, i32) {
    %c0_i32 = arith.constant 0 : i32
    %c0_i32_0 = arith.constant 0 : i32
    return %arg1, %arg0, %c0_i32 : i32, i32, i32
  }
}

</mosaic_0001>

<bundles_post_ra>
// kernel: grud_ode_sequence.1
= control target key start
LH: loop header
LB: loop body
LE: loop exit
PB: predicated region body
PF: predicated region fallthrough
CT: control target
= control target key end

     0   :  { %s828_s18 = smov 0   ;;  %s830_s19 = smov 0   ;;  %s960_s0 = inlined_call_operand.vmem [shape: f32[8,3,8,128], index: 0, kind: input, shape index: {}]   ;;  %s961_s1 = inlined_call_operand.vmem [shape: f32[8,32], index: 1, kind: input, shape index: {}]   ;;  %s962_s2 = inlined_call_operand.vmem [shape: f32[128,128], index: 2, kind: input, shape index: {}]   ;;  %s963_s3 = inlined_call_operand.vmem [shape: f32[1,128], index: 3, kind: input, shape index: {}]   ;;  %s964_s4 = inlined_call_operand.vmem [shape: f32[32,32], index: 4, kind: input, shape index: {}]   ;;  %s965_s5 = inlined_call_operand.vmem [shape: f32[8,8,128], index: 5, kind: output, shape index: {}]  }
   0x1   :  { %s832_s20 = smov 0  }
   0x2 LB: > { %s24_s21 = sadd.s32 1, %s784_s19  ;;  %p618_p0 = scmp.ge.s32.totalorder %s788_s20, 1  ;;  %s788_s20 = sphi %s832_s20, %s15_s20   ;;  %s784_s19 = sphi %s830_s19, %s967_s19   ;;  %s780_s18 = sphi %s828_s18, %s966_s18  }
   0x3   : > { %p25_p1 = scmp.ge.s32.totalorder %s24_s21, 8  ;;  %p215_p2 = scmp.lt.s32.totalorder %s788_s20, 9 }
   0x5   : > { %s969_s21 = smov (%p25_p1, %s24_s21), 0  ;;  %p216_p3 = pnand %p618_p0, %p215_p2 }
   0x6   : > { %p252_p4 = scmp.lt.s32.totalorder (!%p216_p3), %s780_s18, 7  ;;  %p621_p5 = scmp.ne.s32.totalorder (!%p216_p3), %s780_s18, 0 }
   0x7   : > { %219 = sbr.rel (%p216_p3) target bundleno = 970 (0x3ca), region = 40 }
   0xe   : > { %s253_s22 = scalar_select %p252_p4, %s780_s18, 7 }
   0xf   : > { %274 = sbr.rel (%p621_p5) target bundleno = 22 (0x16), region = 44  ;;  %v275_v0 = vld [vmem:[%s961_s1] sm:$0xff] (!%p621_p5)  ;;  %vm276_vm0 = vcmask (!%p621_p5), 261120   ;;  %v790_v1 = vmov (!%p621_p5), 0.0  }
  0x10   : > { %s727_s23 = smul.u32 24, %s253_s22  ;;  %s620_s24 = sshll.u32 %s253_s22, 3  ;;  %277 = vst.msk [vmem:[#allocation2] sm:$0xff] (!%p621_p5), %vm276_vm0, %v275_v0  ;;  %278 = vst [vmem:[#allocation3] sm:$0xff] (!%p621_p5), %v790_v1 }
  0x11   : > { %s849_s27 = scalar_lea.vmem %s965_s5, %s620_s24 }
  0x12   : > { %s259_s30 = scalar_lea.vmem %s960_s0, %s727_s23 }
  0x16 PF: > { %v622_v2 = vld [vmem:[%s259_s30 + $0x8] sm:$0xff]  ;;  %v623_v3 = vld [vmem:[%s259_s30 + $0x10] sm:$0xff]  ;;  %v279_v4 = vld [vmem:[%s259_s30] sm:$0xff]  ;;  %s791_s8 = smov 16   ;;  %v792_v7 = vmov 0.0|0.0   ;;  %vm793_vm1 = vmmov 0  }
  0x17   : > { %292 = vrot.lane.b32.xlu0 %v622_v2, %s791_s8  ;;  %v285_v5 = vmul.f32 %v622_v2, %v279_v4  ;;  %v286_v6 = vsub.f32 1.0, %v622_v2  ;;  %697 = vmatprep.subr.bf16.mxu0 %v792_v7  ;;  %v303_v8 = vld [vmem:[%s962_s2] sm:$0xff]  ;;  %v304_v9 = vld [vmem:[%s962_s2 + $0x8] sm:$0xff]  ;;  %v305_v12 = vld [vmem:[%s962_s2 + $0x10] sm:$0xff]  ;;  %v794_v15 = vmov 0.0   ;;  %vm289_vm2 = vcmask 130048  }
  0x18   : > { %v864_v10 = vld [vmem:[#allocation2] sm:$0xff]  ;;  %v698_v11 = vpack.c.bf16 %v304_v9, %v303_v8  ;;  %v306_v13 = vld [vmem:[%s962_s2 + $0x18] sm:$0xff]  ;;  %721 = vmatprep.subr.bf16.mxu1 %v792_v7  ;;  %683 = vmatprep.mubr.msk.f32.mxu0 %vm793_vm1, %v794_v15  ;;  %s795_s17 = smov 32   ;;  %v308_v18 = vld [vmem:[%s962_s2 + $0x28] sm:$0xff]  ;;  %vm295_vm3 = vcmask 261248   ;;  %vm301_vm4 = vcmask 523520  }
  0x19   : > { %v287_v14 = vmul.f32 %v623_v3, %v286_v6  ;;  %694 = vmatprep.mubr.msk.f32.mxu1 %vm793_vm1, %v794_v15  ;;  %v701_v16 = vpack.c.bf16 %v306_v13, %v305_v12  ;;  %v307_v17 = vld [vmem:[%s962_s2 + $0x20] sm:$0xff]  ;;  %v309_v21 = vld [vmem:[%s962_s2 + $0x30] sm:$0xff]  ;;  %v310_v22 = vld [vmem:[%s962_s2 + $0x38] sm:$0xff]  ;;  %vm408_vm5 = vcmask 261120   ;;  %s796_s10 = smov 64   ;;  %s797_s11 = smov 96  }
  0x1a   : > { %699 = vmatpush3.bf16.msra.mxu0 %v698_v11  ;;  %v704_v20 = vpack.c.bf16 %v308_v18, %v307_v17  ;;  %v707_v23 = vpack.c.bf16 %v310_v22, %v309_v21  ;;  %v311_v24 = vld [vmem:[%s962_s2 + $0x40] sm:$0xff]  ;;  %v312_v25 = vld [vmem:[%s962_s2 + $0x48] sm:$0xff]  ;;  %v313_v27 = vld [vmem:[%s962_s2 + $0x50] sm:$0xff]  ;;  %vm516_vm6 = vcmask 654848   ;;  %vm518_vm7 = vcmask 1048192  }
  0x1b   : > { %298 = vrot.lane.b32.xlu0 %v864_v10, %s795_s17  ;;  %700 = vmatprep.subr.bf16.mxu0 %v792_v7  ;;  %v883_v19 = vadd.f32 %v287_v14, %v285_v5  ;;  %v710_v26 = vpack.c.bf16 %v312_v25, %v311_v24  ;;  %v314_v28 = vld [vmem:[%s962_s2 + $0x58] sm:$0xff]  ;;  %v315_v30 = vld [vmem:[%s962_s2 + $0x60] sm:$0xff]  ;;  %v316_v31 = vld [vmem:[%s962_s2 + $0x68] sm:$0xff] }
  0x1c   : > { %v713_v29 = vpack.c.bf16 %v314_v28, %v313_v27  ;;  %v716_v32 = vpack.c.bf16 %v316_v31, %v315_v30  ;;  %v317_v33 = vld [vmem:[%s962_s2 + $0x70] sm:$0xff]  ;;  %v318_v34 = vld [vmem:[%s962_s2 + $0x78] sm:$0xff]  ;;  %v403_v39 = vld [vmem:[%s964_s4] sm:$0xff] }
  0x1d   : > { %290 = vst.msk [vmem:[#allocation3] sm:$0xff] %vm289_vm2, %v883_v19  ;;  %v719_v35 = vpack.c.bf16 %v318_v34, %v317_v33  ;;  %v404_v40 = vld [vmem:[%s964_s4 + $0x8] sm:$0xff]  ;;  %v405_v41 = vld [vmem:[%s964_s4 + $0x10] sm:$0xff]  ;;  %v406_v43 = vld [vmem:[%s964_s4 + $0x18] sm:$0xff] }
  0x1e   : > { %702 = vmatpush3.bf16.msra.mxu0 %v701_v16  ;;  %v722_v42 = vpack.c.bf16 %v404_v40, %v403_v39  ;;  %v725_v44 = vpack.c.bf16 %v406_v43, %v405_v41  ;;  %v624_v45 = vld [vmem:[%s963_s3] ss:$0 sm:$0xff] }
  0x1f   : > { %703 = vmatprep.subr.bf16.mxu0 %v792_v7  ;;  %496 = vrot.lane.b32.xlu0 %v864_v10, %s796_s10 }
  0x20   : > { %723 = vmatpush3.bf16.msra.mxu1 %v722_v42 }
  0x21   : > { %724 = vmatprep.subr.bf16.mxu1 %v792_v7 }
  0x22   : > { %705 = vmatpush3.bf16.msra.mxu0 %v704_v20 }
  0x23   : > { %706 = vmatprep.subr.bf16.mxu0 %v792_v7 }
  0x24   : > { %726 = vmatpush3.bf16.msra.mxu1 %v725_v44 }
  0x26   : > { %708 = vmatpush3.bf16.msra.mxu0 %v707_v23 }
  0x27   : > { %709 = vmatprep.subr.bf16.mxu0 %v792_v7 }
  0x2a   : > { %711 = vmatpush3.bf16.msra.mxu0 %v710_v26 }
  0x2b   : > { %712 = vmatprep.subr.bf16.mxu0 %v792_v7 }
  0x2e   : > { %714 = vmatpush3.bf16.msra.mxu0 %v713_v29 }
  0x2f   : > { %715 = vmatprep.subr.bf16.mxu0 %v792_v7 }
  0x32   : > { %717 = vmatpush3.bf16.msra.mxu0 %v716_v32 }
  0x33   : > { %718 = vmatprep.subr.bf16.mxu0 %v792_v7 }
  0x36   : > { %720 = vmatpush3.bf16.msra.mxu0 %v719_v35 }
  0x89   : > { %v293_v36 = vpop.permute.xlu0 %292 }
  0x8a   : > { %296 = vst.msk [vmem:[#allocation3] sm:$0xff] %vm295_vm3, %v293_v36 }
  0x8d   : > { %v299_v37 = vpop.permute.xlu0 %298 }
  0x8e   : > { %302 = vst.msk [vmem:[#allocation3] sm:$0xff] %vm301_vm4, %v299_v37 }
  0x91   : > { %v497_v59 = vpop.permute.xlu0 %496 }
  0x95   : > { %v319_v38 = vld [vmem:[#allocation3] sm:$0xff] }
  0x96   : > { %684 = vmatmul.mubr.f32.vlgmr.msra.gmra.mrb[0].mxu0 %v319_v38 }
 0x169   : > { %v393_v46 = vpop.f32.mrb[0].mxu0 }
 0x16a   : > { %v394_v47 = vadd.f32 %v624_v45, %v393_v46  ;;  %v685_v48 = vpop.f32.mrb[1].mxu0 }
 0x16c   : > { %v625_v49 = vmul.f32 -1.442695, %v394_v47 }
 0x16e   : > { %760 = vpow2.f32 %v625_v49 }
 0x178   : > { %v761_v50 = vpop.eup %760 }
 0x179   : > { %v400_v51 = vadd.f32 1.0, %v761_v50 }
 0x17b   : > { %762 = vrcp.f32 %v400_v51 }
 0x185   : > { %v763_v52 = vpop.eup %762 }
 0x186   : > { %v407_v53 = vmul.f32 %v763_v52, %v864_v10  ;;  %v488_v61 = vsub.f32 1.0, %v763_v52 }
 0x188   : > { %695 = vmatmul.mubr.msk.f32.vlgmr.msra.gmra.mrb[0].mxu1 %vm408_vm5, %v407_v53  ;;  %v489_v63 = vmul.f32 %v488_v61, %v299_v37 }
 0x25b   : > { %v478_v54 = vpop.f32.mrb[0].mxu1 }
 0x25c   : > { %483 = vrot.lane.b32.xlu1 %v478_v54, %s796_s10  ;;  %v696_v55 = vpop.f32.mrb[1].mxu1 }
 0x2ce   : > { %v484_v56 = vpop.permute.xlu1 %483 }
 0x2cf   : > { %v486_v57 = vadd.f32 %v484_v56, %v394_v47 }
 0x2d1   : > { %764 = vtanh.f32 %v486_v57 }
 0x2db   : > { %v765_v58 = vpop.eup %764 }
 0x2dc   : > { %491 = vrot.lane.b32.xlu1 %v765_v58, %s797_s11  ;;  %v499_v60 = vsub.f32 %v765_v58, %v497_v59 }
 0x2e0   : > { %501 = vrot.lane.b32.xlu1 %v499_v60, %s797_s11 }
 0x2e4   : > { %513 = vrot.lane.b32.xlu1 %v883_v19, %s796_s10 }
 0x34e   : > { %v492_v62 = vpop.permute.xlu1 %491 }
 0x34f   : > { %v494_v0 = vmul.f32 %v763_v52, %v492_v62 }
 0x351   : > { %v495_v1 = vadd.f32 %v494_v0, %v489_v63 }
 0x352   : > { %v502_v2 = vpop.permute.xlu1 %501 }
 0x353   : > { %506 = vrot.lane.b32.xlu0 %v495_v1, %s797_s11  ;;  %v504_v3 = vmul.f32 %v763_v52, %v502_v2 }
 0x356   : > { %v514_v5 = vpop.permute.xlu1 %513 }
 0x3c5   : > { %v507_v4 = vpop.permute.xlu0 %506 }
 0x3c6   : > { %509 = vst.msk [vmem:[#allocation2] sm:$0xff] %vm408_vm5, %v507_v4  ;;  %510 = vst.msk [vmem:[%s849_s27] sm:$0xff] %vm408_vm5, %v507_v4 }
 0x3c7   : > { %511 = vst.msk [vmem:[%s849_s27] sm:$0xff] %vm301_vm4, %v504_v3 }
 0x3c8   : > { %517 = vst.msk [vmem:[%s849_s27] sm:$0xff] %vm516_vm6, %v514_v5 }
 0x3c9   : > { %519 = vst.msk [vmem:[%s849_s27] sm:$0xff] %vm518_vm7, %v794_v15 }
 0x3ca PF: > { %s15_s20 = sadd.s32 1, %s788_s20   ;;  %s966_s18 = smov %s784_s19 }
 0x3cb   : > { %p12_p6 = scmp.ge.s32.totalorder %s15_s20, 10   ;;  %s967_s19 = smov %s969_s21 }
 0x3cd   :  { %14 = sbr.rel (!%p12_p6) target bundleno = 2 (0x2), region = 79 }

</bundles_post_ra>
